<compile_context>
chip_gen: v5e
topology: v5e:2x2
jax: 0.10.0
libtpu: 0.0.40
codegen_flags: <defaults>
</compile_context>

<pallas_src>
import functools
import warnings

import numpy as np
import jax
import jax.numpy as jnp
from jax.experimental import pallas as pl
from jax.experimental.pallas import tpu as pltpu

# ---- module hyper-parameters (ICUSTOMIntSoftmax.__init__ defaults) -----------
OUTPUT_BIT = 8
N_BITS = 24
SEGMENTS = 16
DEGREE = 2
INPUT_RANGE = (-10.0, 0.0)


def _fit_piecewise_polynomials():
    """Deterministic fit of piecewise quadratics to exp(x) on [-10, 0]
    (host-side numpy, identical to the PyTorch module's __init__)."""
    x_lo, x_hi = INPUT_RANGE
    xs = np.linspace(x_lo, x_hi, 10000, dtype=np.float32)
    ys = np.exp(xs)
    bounds = np.linspace(x_lo, x_hi, SEGMENTS + 1, dtype=np.float32)
    lo_f, hi_f, coeffs = [], [], []
    with warnings.catch_warnings():
        warnings.simplefilter("ignore")      # polyfit RankWarning (same as torch)
        for lo, hi in zip(bounds[:-1], bounds[1:]):
            mask = (xs >= lo) & (xs <= hi)
            c = np.polyfit(xs[mask], ys[mask], DEGREE).astype(np.float32)
            lo_f.append(lo)
            hi_f.append(hi)
            coeffs.append(c)
    return (np.asarray(lo_f, np.float32),
            np.asarray(hi_f, np.float32),
            np.stack(coeffs).astype(np.float32))


LO_F, HI_F, COEFFS_F = _fit_piecewise_polynomials()


def _integer_tables(s):
    """Tiny runtime integer segment bounds + integer polynomial coefficients,
    mirroring ICUSTOMIntSoftmax.int_exp_poly's table construction."""
    s = jnp.asarray(s, jnp.float32)
    lo_i = jnp.floor(jnp.asarray(LO_F) / s)
    hi_i = jnp.floor(jnp.asarray(HI_F) / s)
    powers = jnp.stack([s ** jnp.float32(DEGREE - j) for j in range(DEGREE + 1)])
    coeffs_i = jnp.floor((jnp.asarray(COEFFS_F) * powers[None, :])
                         * jnp.float32(2.0 ** N_BITS))
    return (lo_i.astype(jnp.float32),
            hi_i.astype(jnp.float32),
            coeffs_i.astype(jnp.float32))


# ------------------------------ Pallas kernel --------------------------------
def _int_softmax_kernel(inv_s_ref, lo_ref, c_ref, x_ref, o_ref, *, reduce_axis):
    # inv_s_ref: (1,)                   f32 SMEM  -- 1 / scaling_factor
    # lo_ref   : (SEGMENTS,)            f32 SMEM  -- integer segment lower bounds
    # c_ref    : (SEGMENTS*(DEGREE+1),) f32 SMEM  -- integer poly coefficients (flat)
    # x_ref / o_ref: VMEM blocks, input dtype.
    #   reduce_axis = -1 : (rows, L) layout, softmax axis on lanes   (L >= 128)
    #   reduce_axis =  0 : (L, rows) layout, rows on lanes, softmax on sublanes
    inv_s = inv_s_ref[0]
    x = x_ref[...].astype(jnp.float32)

    # Integer quantization, kept in f32 (values are exact integers, |.| < 2^24).
    # Scalar reciprocal instead of a per-element divide; may differ from
    # floor(x/s) by one bin at exact boundaries (within output quantization).
    x_int = jnp.floor(x * inv_s)
    x_int = x_int - jnp.max(x_int, axis=reduce_axis, keepdims=True)      # <= 0

    # Segment selection: torch applies masks 0..S-1 with overwrite, so the
    # effective segment is the LAST matching one.  With monotone integer bounds
    # that equals "largest k with x_int >= lo[k]", reproduced exactly by a
    # cumulative select chain.  Segment 0 also covers extrapolation below the
    # fit range (same as the torch module).
    cs = [c_ref[d] for d in range(DEGREE + 1)]
    for k in range(1, SEGMENTS):
        m = x_int >= lo_ref[k]
        base = k * (DEGREE + 1)
        cs = [jnp.where(m, c_ref[base + d], cs[d]) for d in range(DEGREE + 1)]

    # Single Horner evaluation, all-f32: the first product |c0 * x_int| < 2^24
    # for the default range/scale, so it is exact and matches the torch
    # int32-first-multiply promotion bit-for-bit.
    r = cs[0]
    for d in range(1, DEGREE + 1):
        r = r * x_int + cs[d]
    exp_int = r

    exp_sum = jnp.maximum(jnp.sum(exp_int, axis=reduce_axis, keepdims=True),
                          jnp.float32(1.0))
    factor = jnp.floor(jnp.float32(2.0 ** 31 - 1) / exp_sum)
    factor = jnp.minimum(factor, jnp.float32(2.0 ** (32 - OUTPUT_BIT)))
    # Fold the /2^(32-OUTPUT_BIT) into the per-row factor (exact power-of-two
    # scaling, identical rounding/floor to the reference's divide).
    normalized_int = jnp.floor(exp_int *
                               (factor * jnp.float32(2.0 ** -(32 - OUTPUT_BIT))))
    out = normalized_int * jnp.float32(2.0 ** -(OUTPUT_BIT - 1))
    o_ref[...] = out.astype(o_ref.dtype)


# ------------------------------ wrapper (glue) --------------------------------
def _tpu_budget():
    """(target_block_bytes, min_grid_steps, vmem_limit_bytes) per generation.
    v7x (64 MiB VMEM, 2 TCs): small blocks + many steps for 2-TC balance.
    v5e/v6e (128 MiB VMEM, 1 TC): larger blocks to amortize per-step overhead.
    Safe fallback if the hardware query is unavailable."""
    target_bytes, min_steps, vmem_limit = 1 << 20, 8, 32 * 1024 * 1024
    try:
        info = pltpu.get_tpu_info()
        vmem_cap = getattr(info, "vmem_capacity_bytes", None)
        if vmem_cap is not None:
            if vmem_cap >= 100 * 1024 * 1024:        # v5e / v6e (128 MiB VMEM)
                target_bytes, min_steps, vmem_limit = 2 << 20, 4, 64 * 1024 * 1024
            else:                                     # v7x (64 MiB VMEM, 2 TCs)
                target_bytes, min_steps, vmem_limit = 512 * 1024, 8, 32 * 1024 * 1024
    except Exception:
        pass
    return target_bytes, min_steps, vmem_limit


def _pick_tile(n_along, unit, bytes_per_unit, target_bytes, min_steps):
    """Tile extent (a multiple of `unit`) along the tiled axis: ~target_bytes of
    f32 input per block, but keep at least `min_steps` grid steps when the
    problem is large enough (compute-bound kernel: small steps are cheap)."""
    units_total = -(-n_along // unit)
    tile_units = max(1, target_bytes // max(bytes_per_unit, 1))
    tile_units = min(tile_units, max(1, -(-units_total // min_steps)))
    tile_units = min(tile_units, units_total)
    return tile_units * unit


def icustom_int_softmax(x, scaling_factor):
    """Returns (result, output_scaling_factor), mirroring the PyTorch forward."""
    orig_shape = x.shape
    L = int(orig_shape[-1])
    R = 1
    for d in orig_shape[:-1]:
        R *= int(d)

    s = jnp.asarray(scaling_factor, jnp.float32).reshape(())
    inv_s = (jnp.float32(1.0) / s).reshape(1)
    lo_i, _hi_i, coeffs_i = _integer_tables(s)
    scalar_args = (inv_s, lo_i, coeffs_i.reshape(-1))
    smem_specs = [pl.BlockSpec(memory_space=pltpu.MemorySpace.SMEM)] * 3

    target_bytes, min_steps, vmem_limit = _tpu_budget()
    cparams = pltpu.CompilerParams(dimension_semantics=("parallel",),
                                   vmem_limit_bytes=vmem_limit)

    x2 = x.reshape(R, L)                              # no dtype cast / pad here

    if L < 128:
        # Lane densification: put the independent rows on the 128-lane axis and
        # the (short) softmax axis on sublanes.  The wrapper transpose is one
        # extra HBM pass on a VALU-bound kernel; the compute and stores then
        # run at full lane density instead of L/128.
        xt = x2.T                                      # (L, R)
        tile_cols = _pick_tile(R, 128, L * 128 * 4, target_bytes, min_steps)
        out_t = pl.pallas_call(
            functools.partial(_int_softmax_kernel, reduce_axis=0),
            out_shape=jax.ShapeDtypeStruct((L, R), x.dtype),
            grid=(pl.cdiv(R, tile_cols),),
            in_specs=smem_specs + [pl.BlockSpec((L, tile_cols), lambda i: (0, i))],
            out_specs=pl.BlockSpec((L, tile_cols), lambda i: (0, i)),
            compiler_params=cparams,
        )(*scalar_args, xt)
        out = out_t.T
    else:
        tile_rows = _pick_tile(R, 32, 32 * L * 4, target_bytes, min_steps)
        out = pl.pallas_call(
            functools.partial(_int_softmax_kernel, reduce_axis=-1),
            out_shape=jax.ShapeDtypeStruct((R, L), x.dtype),
            grid=(pl.cdiv(R, tile_rows),),
            in_specs=smem_specs + [pl.BlockSpec((tile_rows, L), lambda i: (i, 0))],
            out_specs=pl.BlockSpec((tile_rows, L), lambda i: (i, 0)),
            compiler_params=cparams,
        )(*scalar_args, x2)

    result = out.reshape(orig_shape)
    output_scaling_factor = jnp.asarray(1.0 / 2.0 ** (OUTPUT_BIT - 1), x.dtype)
    return result, output_scaling_factor


# --------------------- pure-JAX reference (torch semantics) -------------------
def _reference_int_softmax(x, scaling_factor):
    s = jnp.asarray(scaling_factor, jnp.float32)
    lo_i, hi_i, coeffs = _integer_tables(s)
    xf = x.astype(jnp.float32)
    x_int = jnp.floor(xf / s).astype(jnp.int32)        # exact divide (torch path)
    x_int = x_int - jnp.max(x_int, axis=-1, keepdims=True)
    x_f = x_int.astype(jnp.float32)
    exp_int = jnp.zeros_like(x_f)
    for i in range(SEGMENTS):
        if i == 0:
            m = x_f <= hi_i[0]
        elif i == SEGMENTS - 1:
            m = x_f >= lo_i[i]
        else:
            m = (x_f >= lo_i[i]) & (x_f <= hi_i[i])
        r = (coeffs[i, 0].astype(jnp.int32) * x_int).astype(jnp.float32) + coeffs[i, 1]
        for d in range(2, DEGREE + 1):
            r = r * x_f + coeffs[i, d]
        exp_int = jnp.where(m, r, exp_int)
    exp_sum = jnp.maximum(jnp.sum(exp_int, axis=-1, keepdims=True), jnp.float32(1.0))
    factor = jnp.floor(jnp.float32(2.0 ** 31 - 1) / exp_sum)
    factor = jnp.minimum(factor, jnp.float32(2.0 ** (32 - OUTPUT_BIT)))
    normalized_int = jnp.floor(exp_int * factor / jnp.float32(2.0 ** (32 - OUTPUT_BIT)))
    out_scale = 1.0 / 2.0 ** (OUTPUT_BIT - 1)
    return (normalized_int * jnp.float32(out_scale)).astype(x.dtype), \
        jnp.asarray(out_scale, x.dtype)


def _check(x, scaling_factor, tag):
    result, out_scale = jax.jit(icustom_int_softmax)(x, scaling_factor)
    jax.block_until_ready(result)
    ref, _ = _reference_int_softmax(x, scaling_factor)

    assert result.shape == x.shape
    assert result.dtype == x.dtype
    assert bool(jnp.all(jnp.isfinite(result)))

    quantum = 1.0 / 2.0 ** (OUTPUT_BIT - 1)
    # 2 output quanta for floor/rounding-order differences, plus `s` for the
    # rare floor(x * inv_s) vs floor(x / s) one-bin flips (reciprocal path).
    tol = 2.0 * quantum + float(scaling_factor) + 1e-6
    max_err = float(jnp.max(jnp.abs(result.astype(jnp.float32) -
                                    ref.astype(jnp.float32))))
    assert max_err <= tol, f"[{tag}] max |kernel - reference| = {max_err}"
    assert abs(float(out_scale) - quantum) < 1e-9

    # loose sanity check against a real softmax (quantized + floor'd, so coarse)
    sm_err = float(jnp.max(jnp.abs(result - jax.nn.softmax(x, axis=-1))))
    assert sm_err < 0.15, f"[{tag}] softmax sanity deviation = {sm_err}"


if __name__ == "__main__":
    key = jax.random.PRNGKey(0)
    k1, k2 = jax.random.split(key)
    scaling_factor = jnp.float32(0.05)

    # Host-side guard for the all-f32 Horner exactness argument:
    # max|c0| * |lo_i[0]| must stay below 2^24 for the default range/scale.
    c0_max = float(np.max(np.abs(np.floor(COEFFS_F[:, 0] * 0.05 ** 2 * 2.0 ** N_BITS))))
    assert c0_max * abs(np.floor(INPUT_RANGE[0] / 0.05)) < 2.0 ** 24

    # attention-score-like tensor, short softmax axis -> lane-densified path
    x_small_L = jax.random.normal(k1, (2, 4, 16, 16), dtype=jnp.float32)
    _check(x_small_L, scaling_factor, "L=16 transposed/lane-dense path")

    # longer softmax axis -> row-major path (L >= 128)
    x_large_L = jax.random.normal(k2, (2, 4, 8, 256), dtype=jnp.float32)
    _check(x_large_L, scaling_factor, "L=256 row-major path")

    print("KERNEL_OK")
</pallas_src>

<mosaic_0001>
module attributes {stable_mosaic.version = 11 : i64} {
  func.func @_int_softmax_kernel(%arg0: i32, %arg1: memref<1xf32, #tpu.memory_space<smem>>, %arg2: memref<16xf32, #tpu.memory_space<smem>>, %arg3: memref<48xf32, #tpu.memory_space<smem>>, %arg4: memref<16x128xf32, #tpu.memory_space<vmem>>, %arg5: memref<16x128xf32, #tpu.memory_space<vmem>>) attributes {dimension_semantics = [#tpu.dimension_semantics<parallel>], iteration_bounds = array<i64: 1>, scalar_prefetch = 0 : i64, scratch_operands = 0 : i64, tpu.core_type = #tpu.core_type<tc>, window_params = [{transform_indices = @transform_0, window_bounds = array<i64: 1>}, {transform_indices = @transform_1, window_bounds = array<i64: 16>}, {transform_indices = @transform_2, window_bounds = array<i64: 48>}, {transform_indices = @transform_3, window_bounds = array<i64: 16, 128>}, {transform_indices = @transform_4, window_bounds = array<i64: 16, 128>}]} {
    %c0 = arith.constant 0 : index
    %0 = memref.load %arg1[%c0] : memref<1xf32, #tpu.memory_space<smem>>
    %c0_0 = arith.constant 0 : index
    %c0_1 = arith.constant 0 : index
    %1 = vector.load %arg4[%c0_0, %c0_1] : memref<16x128xf32, #tpu.memory_space<vmem>>, vector<16x128xf32>
    %2 = vector.broadcast %0 : f32 to vector<16x128xf32>
    %3 = arith.mulf %1, %2 : vector<16x128xf32>
    %4 = math.floor %3 : vector<16x128xf32>
    %cst = arith.constant dense<0xFF800000> : vector<128xf32>
    %5 = vector.multi_reduction <maximumf>, %4, %cst [0] : vector<16x128xf32> to vector<128xf32>
    %6 = vector.shape_cast %5 : vector<128xf32> to vector<1x128xf32>
    %7 = vector.broadcast %6 : vector<1x128xf32> to vector<16x128xf32>
    %8 = arith.subf %4, %7 : vector<16x128xf32>
    %c0_2 = arith.constant 0 : index
    %9 = memref.load %arg3[%c0_2] : memref<48xf32, #tpu.memory_space<smem>>
    %c1 = arith.constant 1 : index
    %10 = memref.load %arg3[%c1] : memref<48xf32, #tpu.memory_space<smem>>
    %c2 = arith.constant 2 : index
    %11 = memref.load %arg3[%c2] : memref<48xf32, #tpu.memory_space<smem>>
    %c1_3 = arith.constant 1 : index
    %12 = memref.load %arg2[%c1_3] : memref<16xf32, #tpu.memory_space<smem>>
    %13 = vector.broadcast %12 : f32 to vector<16x128xf32>
    %14 = arith.cmpf oge, %8, %13 : vector<16x128xf32>
    %c3 = arith.constant 3 : index
    %15 = memref.load %arg3[%c3] : memref<48xf32, #tpu.memory_space<smem>>
    %16 = vector.broadcast %15 : f32 to vector<16x128xf32>
    %17 = vector.broadcast %9 : f32 to vector<16x128xf32>
    %18 = arith.select %14, %16, %17 : vector<16x128xi1>, vector<16x128xf32>
    %c4 = arith.constant 4 : index
    %19 = memref.load %arg3[%c4] : memref<48xf32, #tpu.memory_space<smem>>
    %20 = vector.broadcast %19 : f32 to vector<16x128xf32>
    %21 = vector.broadcast %10 : f32 to vector<16x128xf32>
    %22 = arith.select %14, %20, %21 : vector<16x128xi1>, vector<16x128xf32>
    %c5 = arith.constant 5 : index
    %23 = memref.load %arg3[%c5] : memref<48xf32, #tpu.memory_space<smem>>
    %24 = vector.broadcast %23 : f32 to vector<16x128xf32>
    %25 = vector.broadcast %11 : f32 to vector<16x128xf32>
    %26 = arith.select %14, %24, %25 : vector<16x128xi1>, vector<16x128xf32>
    %c2_4 = arith.constant 2 : index
    %27 = memref.load %arg2[%c2_4] : memref<16xf32, #tpu.memory_space<smem>>
    %28 = vector.broadcast %27 : f32 to vector<16x128xf32>
    %29 = arith.cmpf oge, %8, %28 : vector<16x128xf32>
    %c6 = arith.constant 6 : index
    %30 = memref.load %arg3[%c6] : memref<48xf32, #tpu.memory_space<smem>>
    %31 = vector.broadcast %30 : f32 to vector<16x128xf32>
    %32 = arith.select %29, %31, %18 : vector<16x128xi1>, vector<16x128xf32>
    %c7 = arith.constant 7 : index
    %33 = memref.load %arg3[%c7] : memref<48xf32, #tpu.memory_space<smem>>
    %34 = vector.broadcast %33 : f32 to vector<16x128xf32>
    %35 = arith.select %29, %34, %22 : vector<16x128xi1>, vector<16x128xf32>
    %c8 = arith.constant 8 : index
    %36 = memref.load %arg3[%c8] : memref<48xf32, #tpu.memory_space<smem>>
    %37 = vector.broadcast %36 : f32 to vector<16x128xf32>
    %38 = arith.select %29, %37, %26 : vector<16x128xi1>, vector<16x128xf32>
    %c3_5 = arith.constant 3 : index
    %39 = memref.load %arg2[%c3_5] : memref<16xf32, #tpu.memory_space<smem>>
    %40 = vector.broadcast %39 : f32 to vector<16x128xf32>
    %41 = arith.cmpf oge, %8, %40 : vector<16x128xf32>
    %c9 = arith.constant 9 : index
    %42 = memref.load %arg3[%c9] : memref<48xf32, #tpu.memory_space<smem>>
    %43 = vector.broadcast %42 : f32 to vector<16x128xf32>
    %44 = arith.select %41, %43, %32 : vector<16x128xi1>, vector<16x128xf32>
    %c10 = arith.constant 10 : index
    %45 = memref.load %arg3[%c10] : memref<48xf32, #tpu.memory_space<smem>>
    %46 = vector.broadcast %45 : f32 to vector<16x128xf32>
    %47 = arith.select %41, %46, %35 : vector<16x128xi1>, vector<16x128xf32>
    %c11 = arith.constant 11 : index
    %48 = memref.load %arg3[%c11] : memref<48xf32, #tpu.memory_space<smem>>
    %49 = vector.broadcast %48 : f32 to vector<16x128xf32>
    %50 = arith.select %41, %49, %38 : vector<16x128xi1>, vector<16x128xf32>
    %c4_6 = arith.constant 4 : index
    %51 = memref.load %arg2[%c4_6] : memref<16xf32, #tpu.memory_space<smem>>
    %52 = vector.broadcast %51 : f32 to vector<16x128xf32>
    %53 = arith.cmpf oge, %8, %52 : vector<16x128xf32>
    %c12 = arith.constant 12 : index
    %54 = memref.load %arg3[%c12] : memref<48xf32, #tpu.memory_space<smem>>
    %55 = vector.broadcast %54 : f32 to vector<16x128xf32>
    %56 = arith.select %53, %55, %44 : vector<16x128xi1>, vector<16x128xf32>
    %c13 = arith.constant 13 : index
    %57 = memref.load %arg3[%c13] : memref<48xf32, #tpu.memory_space<smem>>
    %58 = vector.broadcast %57 : f32 to vector<16x128xf32>
    %59 = arith.select %53, %58, %47 : vector<16x128xi1>, vector<16x128xf32>
    %c14 = arith.constant 14 : index
    %60 = memref.load %arg3[%c14] : memref<48xf32, #tpu.memory_space<smem>>
    %61 = vector.broadcast %60 : f32 to vector<16x128xf32>
    %62 = arith.select %53, %61, %50 : vector<16x128xi1>, vector<16x128xf32>
    %c5_7 = arith.constant 5 : index
    %63 = memref.load %arg2[%c5_7] : memref<16xf32, #tpu.memory_space<smem>>
    %64 = vector.broadcast %63 : f32 to vector<16x128xf32>
    %65 = arith.cmpf oge, %8, %64 : vector<16x128xf32>
    %c15 = arith.constant 15 : index
    %66 = memref.load %arg3[%c15] : memref<48xf32, #tpu.memory_space<smem>>
    %67 = vector.broadcast %66 : f32 to vector<16x128xf32>
    %68 = arith.select %65, %67, %56 : vector<16x128xi1>, vector<16x128xf32>
    %c16 = arith.constant 16 : index
    %69 = memref.load %arg3[%c16] : memref<48xf32, #tpu.memory_space<smem>>
    %70 = vector.broadcast %69 : f32 to vector<16x128xf32>
    %71 = arith.select %65, %70, %59 : vector<16x128xi1>, vector<16x128xf32>
    %c17 = arith.constant 17 : index
    %72 = memref.load %arg3[%c17] : memref<48xf32, #tpu.memory_space<smem>>
    %73 = vector.broadcast %72 : f32 to vector<16x128xf32>
    %74 = arith.select %65, %73, %62 : vector<16x128xi1>, vector<16x128xf32>
    %c6_8 = arith.constant 6 : index
    %75 = memref.load %arg2[%c6_8] : memref<16xf32, #tpu.memory_space<smem>>
    %76 = vector.broadcast %75 : f32 to vector<16x128xf32>
    %77 = arith.cmpf oge, %8, %76 : vector<16x128xf32>
    %c18 = arith.constant 18 : index
    %78 = memref.load %arg3[%c18] : memref<48xf32, #tpu.memory_space<smem>>
    %79 = vector.broadcast %78 : f32 to vector<16x128xf32>
    %80 = arith.select %77, %79, %68 : vector<16x128xi1>, vector<16x128xf32>
    %c19 = arith.constant 19 : index
    %81 = memref.load %arg3[%c19] : memref<48xf32, #tpu.memory_space<smem>>
    %82 = vector.broadcast %81 : f32 to vector<16x128xf32>
    %83 = arith.select %77, %82, %71 : vector<16x128xi1>, vector<16x128xf32>
    %c20 = arith.constant 20 : index
    %84 = memref.load %arg3[%c20] : memref<48xf32, #tpu.memory_space<smem>>
    %85 = vector.broadcast %84 : f32 to vector<16x128xf32>
    %86 = arith.select %77, %85, %74 : vector<16x128xi1>, vector<16x128xf32>
    %c7_9 = arith.constant 7 : index
    %87 = memref.load %arg2[%c7_9] : memref<16xf32, #tpu.memory_space<smem>>
    %88 = vector.broadcast %87 : f32 to vector<16x128xf32>
    %89 = arith.cmpf oge, %8, %88 : vector<16x128xf32>
    %c21 = arith.constant 21 : index
    %90 = memref.load %arg3[%c21] : memref<48xf32, #tpu.memory_space<smem>>
    %91 = vector.broadcast %90 : f32 to vector<16x128xf32>
    %92 = arith.select %89, %91, %80 : vector<16x128xi1>, vector<16x128xf32>
    %c22 = arith.constant 22 : index
    %93 = memref.load %arg3[%c22] : memref<48xf32, #tpu.memory_space<smem>>
    %94 = vector.broadcast %93 : f32 to vector<16x128xf32>
    %95 = arith.select %89, %94, %83 : vector<16x128xi1>, vector<16x128xf32>
    %c23 = arith.constant 23 : index
    %96 = memref.load %arg3[%c23] : memref<48xf32, #tpu.memory_space<smem>>
    %97 = vector.broadcast %96 : f32 to vector<16x128xf32>
    %98 = arith.select %89, %97, %86 : vector<16x128xi1>, vector<16x128xf32>
    %c8_10 = arith.constant 8 : index
    %99 = memref.load %arg2[%c8_10] : memref<16xf32, #tpu.memory_space<smem>>
    %100 = vector.broadcast %99 : f32 to vector<16x128xf32>
    %101 = arith.cmpf oge, %8, %100 : vector<16x128xf32>
    %c24 = arith.constant 24 : index
    %102 = memref.load %arg3[%c24] : memref<48xf32, #tpu.memory_space<smem>>
    %103 = vector.broadcast %102 : f32 to vector<16x128xf32>
    %104 = arith.select %101, %103, %92 : vector<16x128xi1>, vector<16x128xf32>
    %c25 = arith.constant 25 : index
    %105 = memref.load %arg3[%c25] : memref<48xf32, #tpu.memory_space<smem>>
    %106 = vector.broadcast %105 : f32 to vector<16x128xf32>
    %107 = arith.select %101, %106, %95 : vector<16x128xi1>, vector<16x128xf32>
    %c26 = arith.constant 26 : index
    %108 = memref.load %arg3[%c26] : memref<48xf32, #tpu.memory_space<smem>>
    %109 = vector.broadcast %108 : f32 to vector<16x128xf32>
    %110 = arith.select %101, %109, %98 : vector<16x128xi1>, vector<16x128xf32>
    %c9_11 = arith.constant 9 : index
    %111 = memref.load %arg2[%c9_11] : memref<16xf32, #tpu.memory_space<smem>>
    %112 = vector.broadcast %111 : f32 to vector<16x128xf32>
    %113 = arith.cmpf oge, %8, %112 : vector<16x128xf32>
    %c27 = arith.constant 27 : index
    %114 = memref.load %arg3[%c27] : memref<48xf32, #tpu.memory_space<smem>>
    %115 = vector.broadcast %114 : f32 to vector<16x128xf32>
    %116 = arith.select %113, %115, %104 : vector<16x128xi1>, vector<16x128xf32>
    %c28 = arith.constant 28 : index
    %117 = memref.load %arg3[%c28] : memref<48xf32, #tpu.memory_space<smem>>
    %118 = vector.broadcast %117 : f32 to vector<16x128xf32>
    %119 = arith.select %113, %118, %107 : vector<16x128xi1>, vector<16x128xf32>
    %c29 = arith.constant 29 : index
    %120 = memref.load %arg3[%c29] : memref<48xf32, #tpu.memory_space<smem>>
    %121 = vector.broadcast %120 : f32 to vector<16x128xf32>
    %122 = arith.select %113, %121, %110 : vector<16x128xi1>, vector<16x128xf32>
    %c10_12 = arith.constant 10 : index
    %123 = memref.load %arg2[%c10_12] : memref<16xf32, #tpu.memory_space<smem>>
    %124 = vector.broadcast %123 : f32 to vector<16x128xf32>
    %125 = arith.cmpf oge, %8, %124 : vector<16x128xf32>
    %c30 = arith.constant 30 : index
    %126 = memref.load %arg3[%c30] : memref<48xf32, #tpu.memory_space<smem>>
    %127 = vector.broadcast %126 : f32 to vector<16x128xf32>
    %128 = arith.select %125, %127, %116 : vector<16x128xi1>, vector<16x128xf32>
    %c31 = arith.constant 31 : index
    %129 = memref.load %arg3[%c31] : memref<48xf32, #tpu.memory_space<smem>>
    %130 = vector.broadcast %129 : f32 to vector<16x128xf32>
    %131 = arith.select %125, %130, %119 : vector<16x128xi1>, vector<16x128xf32>
    %c32 = arith.constant 32 : index
    %132 = memref.load %arg3[%c32] : memref<48xf32, #tpu.memory_space<smem>>
    %133 = vector.broadcast %132 : f32 to vector<16x128xf32>
    %134 = arith.select %125, %133, %122 : vector<16x128xi1>, vector<16x128xf32>
    %c11_13 = arith.constant 11 : index
    %135 = memref.load %arg2[%c11_13] : memref<16xf32, #tpu.memory_space<smem>>
    %136 = vector.broadcast %135 : f32 to vector<16x128xf32>
    %137 = arith.cmpf oge, %8, %136 : vector<16x128xf32>
    %c33 = arith.constant 33 : index
    %138 = memref.load %arg3[%c33] : memref<48xf32, #tpu.memory_space<smem>>
    %139 = vector.broadcast %138 : f32 to vector<16x128xf32>
    %140 = arith.select %137, %139, %128 : vector<16x128xi1>, vector<16x128xf32>
    %c34 = arith.constant 34 : index
    %141 = memref.load %arg3[%c34] : memref<48xf32, #tpu.memory_space<smem>>
    %142 = vector.broadcast %141 : f32 to vector<16x128xf32>
    %143 = arith.select %137, %142, %131 : vector<16x128xi1>, vector<16x128xf32>
    %c35 = arith.constant 35 : index
    %144 = memref.load %arg3[%c35] : memref<48xf32, #tpu.memory_space<smem>>
    %145 = vector.broadcast %144 : f32 to vector<16x128xf32>
    %146 = arith.select %137, %145, %134 : vector<16x128xi1>, vector<16x128xf32>
    %c12_14 = arith.constant 12 : index
    %147 = memref.load %arg2[%c12_14] : memref<16xf32, #tpu.memory_space<smem>>
    %148 = vector.broadcast %147 : f32 to vector<16x128xf32>
    %149 = arith.cmpf oge, %8, %148 : vector<16x128xf32>
    %c36 = arith.constant 36 : index
    %150 = memref.load %arg3[%c36] : memref<48xf32, #tpu.memory_space<smem>>
    %151 = vector.broadcast %150 : f32 to vector<16x128xf32>
    %152 = arith.select %149, %151, %140 : vector<16x128xi1>, vector<16x128xf32>
    %c37 = arith.constant 37 : index
    %153 = memref.load %arg3[%c37] : memref<48xf32, #tpu.memory_space<smem>>
    %154 = vector.broadcast %153 : f32 to vector<16x128xf32>
    %155 = arith.select %149, %154, %143 : vector<16x128xi1>, vector<16x128xf32>
    %c38 = arith.constant 38 : index
    %156 = memref.load %arg3[%c38] : memref<48xf32, #tpu.memory_space<smem>>
    %157 = vector.broadcast %156 : f32 to vector<16x128xf32>
    %158 = arith.select %149, %157, %146 : vector<16x128xi1>, vector<16x128xf32>
    %c13_15 = arith.constant 13 : index
    %159 = memref.load %arg2[%c13_15] : memref<16xf32, #tpu.memory_space<smem>>
    %160 = vector.broadcast %159 : f32 to vector<16x128xf32>
    %161 = arith.cmpf oge, %8, %160 : vector<16x128xf32>
    %c39 = arith.constant 39 : index
    %162 = memref.load %arg3[%c39] : memref<48xf32, #tpu.memory_space<smem>>
    %163 = vector.broadcast %162 : f32 to vector<16x128xf32>
    %164 = arith.select %161, %163, %152 : vector<16x128xi1>, vector<16x128xf32>
    %c40 = arith.constant 40 : index
    %165 = memref.load %arg3[%c40] : memref<48xf32, #tpu.memory_space<smem>>
    %166 = vector.broadcast %165 : f32 to vector<16x128xf32>
    %167 = arith.select %161, %166, %155 : vector<16x128xi1>, vector<16x128xf32>
    %c41 = arith.constant 41 : index
    %168 = memref.load %arg3[%c41] : memref<48xf32, #tpu.memory_space<smem>>
    %169 = vector.broadcast %168 : f32 to vector<16x128xf32>
    %170 = arith.select %161, %169, %158 : vector<16x128xi1>, vector<16x128xf32>
    %c14_16 = arith.constant 14 : index
    %171 = memref.load %arg2[%c14_16] : memref<16xf32, #tpu.memory_space<smem>>
    %172 = vector.broadcast %171 : f32 to vector<16x128xf32>
    %173 = arith.cmpf oge, %8, %172 : vector<16x128xf32>
    %c42 = arith.constant 42 : index
    %174 = memref.load %arg3[%c42] : memref<48xf32, #tpu.memory_space<smem>>
    %175 = vector.broadcast %174 : f32 to vector<16x128xf32>
    %176 = arith.select %173, %175, %164 : vector<16x128xi1>, vector<16x128xf32>
    %c43 = arith.constant 43 : index
    %177 = memref.load %arg3[%c43] : memref<48xf32, #tpu.memory_space<smem>>
    %178 = vector.broadcast %177 : f32 to vector<16x128xf32>
    %179 = arith.select %173, %178, %167 : vector<16x128xi1>, vector<16x128xf32>
    %c44 = arith.constant 44 : index
    %180 = memref.load %arg3[%c44] : memref<48xf32, #tpu.memory_space<smem>>
    %181 = vector.broadcast %180 : f32 to vector<16x128xf32>
    %182 = arith.select %173, %181, %170 : vector<16x128xi1>, vector<16x128xf32>
    %c15_17 = arith.constant 15 : index
    %183 = memref.load %arg2[%c15_17] : memref<16xf32, #tpu.memory_space<smem>>
    %184 = vector.broadcast %183 : f32 to vector<16x128xf32>
    %185 = arith.cmpf oge, %8, %184 : vector<16x128xf32>
    %c45 = arith.constant 45 : index
    %186 = memref.load %arg3[%c45] : memref<48xf32, #tpu.memory_space<smem>>
    %187 = vector.broadcast %186 : f32 to vector<16x128xf32>
    %188 = arith.select %185, %187, %176 : vector<16x128xi1>, vector<16x128xf32>
    %c46 = arith.constant 46 : index
    %189 = memref.load %arg3[%c46] : memref<48xf32, #tpu.memory_space<smem>>
    %190 = vector.broadcast %189 : f32 to vector<16x128xf32>
    %191 = arith.select %185, %190, %179 : vector<16x128xi1>, vector<16x128xf32>
    %c47 = arith.constant 47 : index
    %192 = memref.load %arg3[%c47] : memref<48xf32, #tpu.memory_space<smem>>
    %193 = vector.broadcast %192 : f32 to vector<16x128xf32>
    %194 = arith.select %185, %193, %182 : vector<16x128xi1>, vector<16x128xf32>
    %195 = arith.mulf %188, %8 : vector<16x128xf32>
    %196 = arith.addf %195, %191 : vector<16x128xf32>
    %197 = arith.mulf %196, %8 : vector<16x128xf32>
    %198 = arith.addf %197, %194 : vector<16x128xf32>
    %cst_18 = arith.constant dense<0.000000e+00> : vector<128xf32>
    %199 = vector.multi_reduction <add>, %198, %cst_18 [0] : vector<16x128xf32> to vector<128xf32>
    %200 = vector.shape_cast %199 : vector<128xf32> to vector<1x128xf32>
    %cst_19 = arith.constant 1.000000e+00 : f32
    %201 = vector.broadcast %cst_19 : f32 to vector<1x128xf32>
    %202 = arith.maximumf %200, %201 : vector<1x128xf32>
    %cst_20 = arith.constant 2.14748365E+9 : f32
    %203 = vector.broadcast %cst_20 : f32 to vector<1x128xf32>
    %204 = arith.divf %203, %202 : vector<1x128xf32>
    %205 = math.floor %204 : vector<1x128xf32>
    %cst_21 = arith.constant 0x4B800000 : f32
    %206 = vector.broadcast %cst_21 : f32 to vector<1x128xf32>
    %207 = arith.minimumf %205, %206 : vector<1x128xf32>
    %cst_22 = arith.constant 5.96046448E-8 : f32
    %208 = vector.broadcast %cst_22 : f32 to vector<1x128xf32>
    %209 = arith.mulf %207, %208 : vector<1x128xf32>
    %210 = vector.broadcast %209 : vector<1x128xf32> to vector<16x128xf32>
    %211 = arith.mulf %198, %210 : vector<16x128xf32>
    %212 = math.floor %211 : vector<16x128xf32>
    %cst_23 = arith.constant 7.812500e-03 : f32
    %213 = vector.broadcast %cst_23 : f32 to vector<16x128xf32>
    %214 = arith.mulf %212, %213 : vector<16x128xf32>
    %c0_24 = arith.constant 0 : index
    %c0_25 = arith.constant 0 : index
    %215 = vector.load %arg5[%c0_24, %c0_25] : memref<16x128xf32, #tpu.memory_space<vmem>>, vector<16x128xf32>
    tpu.vector_store %arg5[%c0_24, %c0_25], %214 {strides = array<i32>} : memref<16x128xf32, #tpu.memory_space<vmem>>, vector<16x128xf32>,
    return
  }
  func.func @transform_0(%arg0: i32) -> i32 {
    %c0_i32 = arith.constant 0 : i32
    %c0_i32_0 = arith.constant 0 : i32
    return %c0_i32 : i32
  }
  func.func @transform_1(%arg0: i32) -> i32 {
    %c0_i32 = arith.constant 0 : i32
    %c0_i32_0 = arith.constant 0 : i32
    return %c0_i32 : i32
  }
  func.func @transform_2(%arg0: i32) -> i32 {
    %c0_i32 = arith.constant 0 : i32
    %c0_i32_0 = arith.constant 0 : i32
    return %c0_i32 : i32
  }
  func.func @transform_3(%arg0: i32) -> (i32, i32) {
    %c0_i32 = arith.constant 0 : i32
    %c0_i32_0 = arith.constant 0 : i32
    return %c0_i32, %arg0 : i32, i32
  }
  func.func @transform_4(%arg0: i32) -> (i32, i32) {
    %c0_i32 = arith.constant 0 : i32
    %c0_i32_0 = arith.constant 0 : i32
    return %c0_i32, %arg0 : i32, i32
  }
}

</mosaic_0001>

<bundles_post_ra>
// kernel: icustom_int_softmax.1
= control target key start
LH: loop header
LB: loop body
LE: loop exit
PB: predicated region body
PF: predicated region fallthrough
CT: control target
= control target key end

     0   :  { %10 = vsyncpa [#allocation4], 0  ;;  %s991_s0 = inlined_call_operand.<no memory space> [shape: f32[1], index: 0, kind: input, shape index: {}]   ;;  %s992_s1 = inlined_call_operand.vmem [shape: f32[16], index: 1, kind: input, shape index: {}]   ;;  %s993_s2 = inlined_call_operand.vmem [shape: f32[48], index: 2, kind: input, shape index: {}]   ;;  %s994_s3 = inlined_call_operand.vmem [shape: f32[16,128], index: 3, kind: input, shape index: {}]   ;;  %s995_s4 = inlined_call_operand.vmem [shape: f32[16,128], index: 4, kind: output, shape index: {}]  }
   0x1   :  { %s19_s17 = sshll.u32 %s992_s1, 4  ;;  %s20_s17 = int_to_ptr.vmem [resolvable:$true] %s19_s17 }
   0x2   :  { %11 = vsyncpa [#allocation6], 0  ;;  %s28_s20 = sshll.u32 %s993_s2, 4  ;;  %s448_s21 = smov [#allocation3]   ;;  %s29_s20 = int_to_ptr.vmem [resolvable:$true] %s28_s20 }
   0x3   :  { %22 = dma.vmem_to_smem %s20_s17, 16, %s448_s21, [#allocation4]  }
   0x4   :  { %s449_s22 = smov [#allocation5]  }
   0x5   :  { %31 = dma.vmem_to_smem %s29_s20, 16, %s449_s22, [#allocation6]  }
   0x6   :  { %444 = dma.done.wait [#allocation4], 16  }
   0x7   :  { %445 = vsyncadd [#allocation4], 4294967280 }
   0x8   :  { %446 = dma.done.wait [#allocation6], 16  }
   0x9   :  { %447 = vsyncadd [#allocation6], 4294967280 }
   0xa   :  { %42 = sfence }
   0xb   :  { %v44_v0 = vld [vmem:[%s994_s3] sm:$0xff]  ;;  %v45_v1 = vld [vmem:[%s994_s3 + $0x8] sm:$0xff]  ;;  %v46_v2 = vstv %s991_s0  ;;  %s490_s27 = sld [smem:[#allocation5]] }
   0xc   :  { %v47_v3 = vmul.f32 %v46_v2, %v44_v0  ;;  %v48_v4 = vmul.f32 %v46_v2, %v45_v1  ;;  %s492_s28 = sld [smem:[#allocation5 + $0x1]] }
   0xd   :  { %s494_s29 = sld [smem:[#allocation5 + $0x2]] }
   0xe   :  { %v49_v5 = vfloor.f32 %v47_v3  ;;  %v50_v6 = vfloor.f32 %v48_v4  ;;  %s496_s30 = sld [smem:[#allocation3 + $0x1]] }
   0xf   :  { %s498_s5 = sld [smem:[#allocation5 + $0x3]] }
  0x10   :  { %v51_v7 = vmax.f32 %v49_v5, %v50_v6  ;;  %s500_s3 = sld [smem:[#allocation5 + $0x4]] }
  0x11   :  { %s502_s6 = sld [smem:[#allocation5 + $0x5]]  ;;  %v69_v19 = vstv %s490_s27 }
  0x12   :  { %v52_v8 = vrot.slane %v51_v7, 4  ;;  %s504_s0 = sld [smem:[#allocation3 + $0x2]]  ;;  %v74_v23 = vstv %s492_s28 }
  0x13   :  { %s506_s7 = sld [smem:[#allocation5 + $0x6]]  ;;  %v79_v25 = vstv %s494_s29 }
  0x14   :  { %v53_v9 = vmax.f32 %v51_v7, %v52_v8  ;;  %s508_s8 = sld [smem:[#allocation5 + $0x7]]  ;;  %v64_v14 = vstv %s496_s30 }
  0x15   :  { %s510_s9 = sld [smem:[#allocation5 + $0x8]]  ;;  %v68_v18 = vstv %s498_s5 }
  0x16   :  { %v54_v10 = vrot.slane %v53_v9, 2  ;;  %s512_s10 = sld [smem:[#allocation3 + $0x3]]  ;;  %v73_v22 = vstv %s500_s3 }
  0x17   :  { %s514_s11 = sld [smem:[#allocation5 + $0x9]]  ;;  %v78_v24 = vstv %s502_s6 }
  0x18   :  { %v55_v11 = vmax.f32 %v53_v9, %v54_v10  ;;  %s516_s12 = sld [smem:[#allocation5 + $0xa]]  ;;  %v83_v20 = vstv %s504_s0 }
  0x19   :  { %s518_s13 = sld [smem:[#allocation5 + $0xb]]  ;;  %v87_v28 = vstv %s506_s7 }
  0x1a   :  { %v56_v12 = vrot.slane %v55_v11, 1  ;;  %s520_s14 = sld [smem:[#allocation3 + $0x4]]  ;;  %v91_v33 = vstv %s508_s8 }
  0x1b   :  { %s522_s15 = sld [smem:[#allocation5 + $0xc]]  ;;  %v95_v37 = vstv %s510_s9 }
  0x1c   :  { %v57_v13 = vmax.f32 %v55_v11, %v56_v12  ;;  %s524_s16 = sld [smem:[#allocation5 + $0xd]]  ;;  %v99_v29 = vstv %s512_s10 }
  0x1d   :  { %s527_s17 = sld [smem:[#allocation5 + $0xe]]  ;;  %v103_v40 = vstv %s514_s11 }
  0x1e   :  { %v529_v15 = vsub.f32 %v49_v5, %v57_v13  ;;  %v531_v16 = vsub.f32 %v50_v6, %v57_v13  ;;  %s533_s18 = sld [smem:[#allocation3 + $0x5]]  ;;  %v107_v45 = vstv %s516_s12 }
  0x1f   :  { %s535_s19 = sld [smem:[#allocation5 + $0xf]]  ;;  %v111_v49 = vstv %s518_s13 }
  0x20   :  { %vm538_vm0 = vcmp.ge.f32.partialorder %v529_v15, %v64_v14  ;;  %s545_s20 = sld [smem:[#allocation5 + $0x10]]  ;;  %vm548_vm1 = vcmp.ge.f32.partialorder %v531_v16, %v64_v14  ;;  %vm563_vm2 = vcmp.ge.f32.partialorder %v529_v15, %v83_v20  ;;  %vm576_vm3 = vcmp.ge.f32.partialorder %v531_v16, %v83_v20 }
  0x21   :  { %s554_s21 = sld [smem:[#allocation5 + $0x11]]  ;;  %v70_v26 = vsel %vm538_vm0, %v68_v18, %v69_v19  ;;  %v71_v30 = vsel %vm548_vm1, %v68_v18, %v69_v19  ;;  %v75_v31 = vsel %vm538_vm0, %v73_v22, %v74_v23  ;;  %v76_v34 = vsel %vm548_vm1, %v73_v22, %v74_v23 }
  0x22   :  { %s558_s22 = sld [smem:[#allocation3 + $0x6]]  ;;  %v80_v35 = vsel %vm538_vm0, %v78_v24, %v79_v25  ;;  %v81_v36 = vsel %vm548_vm1, %v78_v24, %v79_v25  ;;  %v88_v38 = vsel %vm563_vm2, %v87_v28, %v70_v26  ;;  %vm595_vm4 = vcmp.ge.f32.partialorder %v529_v15, %v99_v29 }
  0x23   :  { %s569_s23 = sld [smem:[#allocation5 + $0x12]]  ;;  %v115_v41 = vstv %s520_s14  ;;  %v89_v42 = vsel %vm576_vm3, %v87_v28, %v71_v30  ;;  %v92_v43 = vsel %vm563_vm2, %v91_v33, %v75_v31  ;;  %vm608_vm5 = vcmp.ge.f32.partialorder %v531_v16, %v99_v29 }
  0x24   :  { %s581_s24 = sld [smem:[#allocation5 + $0x13]]  ;;  %v93_v46 = vsel %vm576_vm3, %v91_v33, %v76_v34  ;;  %v96_v47 = vsel %vm563_vm2, %v95_v37, %v80_v35  ;;  %v97_v48 = vsel %vm576_vm3, %v95_v37, %v81_v36  ;;  %v104_v50 = vsel %vm595_vm4, %v103_v40, %v88_v38 }
  0x25   :  { %s590_s1 = sld [smem:[#allocation5 + $0x14]]  ;;  %vm627_vm6 = vcmp.ge.f32.partialorder %v529_v15, %v115_v41  ;;  %v119_v52 = vstv %s522_s15  ;;  %v131_v53 = vstv %s533_s18  ;;  %v105_v54 = vsel %vm608_vm5, %v103_v40, %v89_v42 }
  0x26   :  { %s601_s25 = sld [smem:[#allocation3 + $0x7]]  ;;  %v108_v55 = vsel %vm595_vm4, %v107_v45, %v92_v43  ;;  %vm640_vm7 = vcmp.ge.f32.partialorder %v531_v16, %v115_v41  ;;  %v123_v57 = vstv %s524_s16  ;;  %v109_v58 = vsel %vm608_vm5, %v107_v45, %v93_v46 }
  0x27   :  { %s613_s26 = sld [smem:[#allocation5 + $0x15]]  ;;  %v112_v59 = vsel %vm595_vm4, %v111_v49, %v96_v47  ;;  %v113_v60 = vsel %vm608_vm5, %v111_v49, %v97_v48  ;;  %v127_v61 = vstv %s527_s17  ;;  %v120_v62 = vsel %vm627_vm6, %v119_v52, %v104_v50 }
  0x28   :  { %s622_s2 = sld [smem:[#allocation5 + $0x16]]  ;;  %vm659_vm8 = vcmp.ge.f32.partialorder %v529_v15, %v131_v53  ;;  %v135_v0 = vstv %s535_s19  ;;  %v147_v1 = vstv %s558_s22  ;;  %v121_v2 = vsel %vm640_vm7, %v119_v52, %v105_v54 }
  0x29   :  { %s633_s27 = sld [smem:[#allocation5 + $0x17]]  ;;  %v124_v3 = vsel %vm627_vm6, %v123_v57, %v108_v55  ;;  %vm672_vm9 = vcmp.ge.f32.partialorder %v531_v16, %v131_v53  ;;  %v139_v5 = vstv %s545_s20  ;;  %v125_v6 = vsel %vm640_vm7, %v123_v57, %v109_v58 }
  0x2a   :  { %s645_s28 = sld [smem:[#allocation3 + $0x8]]  ;;  %v128_v7 = vsel %vm627_vm6, %v127_v61, %v112_v59  ;;  %v129_v8 = vsel %vm640_vm7, %v127_v61, %v113_v60  ;;  %v143_v9 = vstv %s554_s21  ;;  %v136_v10 = vsel %vm659_vm8, %v135_v0, %v120_v62 }
  0x2b   :  { %s654_s29 = sld [smem:[#allocation5 + $0x18]]  ;;  %vm691_vm10 = vcmp.ge.f32.partialorder %v529_v15, %v147_v1  ;;  %v151_v12 = vstv %s569_s23  ;;  %v137_v14 = vsel %vm672_vm9, %v135_v0, %v121_v2  ;;  %v140_v17 = vsel %vm659_vm8, %v139_v5, %v124_v3 }
  0x2c   :  { %s665_s30 = sld [smem:[#allocation5 + $0x19]]  ;;  %v163_v13 = vstv %s601_s25  ;;  %vm704_vm11 = vcmp.ge.f32.partialorder %v531_v16, %v147_v1  ;;  %v155_v19 = vstv %s581_s24  ;;  %v141_v20 = vsel %vm672_vm9, %v139_v5, %v125_v6 }
  0x2d   :  { %s677_s5 = sld [smem:[#allocation5 + $0x1a]]  ;;  %v144_v21 = vsel %vm659_vm8, %v143_v9, %v128_v7  ;;  %v145_v22 = vsel %vm672_vm9, %v143_v9, %v129_v8  ;;  %v159_v23 = vstv %s590_s1  ;;  %v152_v24 = vsel %vm691_vm10, %v151_v12, %v136_v10 }
  0x2e   :  { %s686_s3 = sld [smem:[#allocation3 + $0x9]]  ;;  %vm723_vm12 = vcmp.ge.f32.partialorder %v529_v15, %v163_v13  ;;  %v167_v26 = vstv %s613_s26  ;;  %v153_v28 = vsel %vm704_vm11, %v151_v12, %v137_v14  ;;  %v156_v29 = vsel %vm691_vm10, %v155_v19, %v140_v17 }
  0x2f   :  { %s697_s6 = sld [smem:[#allocation5 + $0x1b]]  ;;  %vm736_vm13 = vcmp.ge.f32.partialorder %v531_v16, %v163_v13  ;;  %v171_v31 = vstv %s622_s2  ;;  %v157_v32 = vsel %vm704_vm11, %v155_v19, %v141_v20  ;;  %v160_v33 = vsel %vm691_vm10, %v159_v23, %v144_v21 }
  0x30   :  { %s709_s0 = sld [smem:[#allocation5 + $0x1c]]  ;;  %v179_v27 = vstv %s645_s28  ;;  %v161_v34 = vsel %vm704_vm11, %v159_v23, %v145_v22  ;;  %v175_v35 = vstv %s633_s27  ;;  %v168_v36 = vsel %vm723_vm12, %v167_v26, %v152_v24 }
  0x31   :  { %s718_s7 = sld [smem:[#allocation5 + $0x1d]]  ;;  %vm755_vm14 = vcmp.ge.f32.partialorder %v529_v15, %v179_v27  ;;  %v183_v38 = vstv %s654_s29  ;;  %v169_v40 = vsel %vm736_vm13, %v167_v26, %v153_v28  ;;  %v172_v41 = vsel %vm723_vm12, %v171_v31, %v156_v29 }
  0x32   :  { %s729_s8 = sld [smem:[#allocation3 + $0xa]]  ;;  %vm768_vm15 = vcmp.ge.f32.partialorder %v531_v16, %v179_v27  ;;  %v187_v43 = vstv %s665_s30  ;;  %v173_v44 = vsel %vm736_vm13, %v171_v31, %v157_v32  ;;  %v176_v45 = vsel %vm723_vm12, %v175_v35, %v160_v33 }
  0x33   :  { %s741_s9 = sld [smem:[#allocation5 + $0x1e]]  ;;  %v191_v46 = vstv %s677_s5  ;;  %v184_v47 = vsel %vm755_vm14, %v183_v38, %v168_v36  ;;  %v177_v51 = vsel %vm736_vm13, %v175_v35, %v161_v34  ;;  %v185_v52 = vsel %vm768_vm15, %v183_v38, %v169_v40 }
  0x34   :  { %s750_s10 = sld [smem:[#allocation5 + $0x1f]]  ;;  %v195_v39 = vstv %s686_s3  ;;  %v188_v53 = vsel %vm755_vm14, %v187_v43, %v172_v41  ;;  %v189_v55 = vsel %vm768_vm15, %v187_v43, %v173_v44  ;;  %v192_v56 = vsel %vm755_vm14, %v191_v46, %v176_v45 }
  0x35   :  { %s761_s11 = sld [smem:[#allocation5 + $0x20]]  ;;  %vm785_vm0 = vcmp.ge.f32.partialorder %v529_v15, %v195_v39  ;;  %v199_v49 = vstv %s697_s6  ;;  %vm800_vm1 = vcmp.ge.f32.partialorder %v531_v16, %v195_v39  ;;  %v193_v62 = vsel %vm768_vm15, %v191_v46, %v177_v51 }
  0x36   :  { %s773_s12 = sld [smem:[#allocation3 + $0xb]]  ;;  %v203_v57 = vstv %s709_s0  ;;  %v200_v59 = vsel %vm785_vm0, %v199_v49, %v184_v47  ;;  %v201_v63 = vsel %vm800_vm1, %v199_v49, %v185_v52 }
  0x37   :  { %s780_s13 = sld [smem:[#allocation5 + $0x21]]  ;;  %v207_v58 = vstv %s718_s7  ;;  %v204_v2 = vsel %vm785_vm0, %v203_v57, %v188_v53  ;;  %v205_v3 = vsel %vm800_vm1, %v203_v57, %v189_v55 }
  0x38   :  { %v211_v50 = vstv %s729_s8  ;;  %s791_s14 = sld [smem:[#allocation5 + $0x22]]  ;;  %v208_v4 = vsel %vm785_vm0, %v207_v58, %v192_v56  ;;  %v209_v18 = vsel %vm800_vm1, %v207_v58, %v193_v62 }
  0x39   :  { %s804_s15 = sld [smem:[#allocation5 + $0x23]]  ;;  %vm817_vm2 = vcmp.ge.f32.partialorder %v529_v15, %v211_v50  ;;  %v215_v61 = vstv %s741_s9  ;;  %vm829_vm3 = vcmp.ge.f32.partialorder %v531_v16, %v211_v50 }
  0x3a   :  { %s812_s16 = sld [smem:[#allocation3 + $0xc]]  ;;  %v219_v5 = vstv %s750_s10  ;;  %v216_v6 = vsel %vm817_vm2, %v215_v61, %v200_v59  ;;  %v217_v10 = vsel %vm829_vm3, %v215_v61, %v201_v63 }
  0x3b   :  { %s822_s17 = sld [smem:[#allocation5 + $0x24]]  ;;  %v223_v7 = vstv %s761_s11  ;;  %v220_v12 = vsel %vm817_vm2, %v219_v5, %v204_v2  ;;  %v221_v13 = vsel %vm829_vm3, %v219_v5, %v205_v3 }
  0x3c   :  { %v227_v1 = vstv %s773_s12  ;;  %s834_s18 = sld [smem:[#allocation5 + $0x25]]  ;;  %v224_v19 = vsel %vm817_vm2, %v223_v7, %v208_v4  ;;  %v225_v29 = vsel %vm829_vm3, %v223_v7, %v209_v18 }
  0x3d   :  { %s843_s19 = sld [smem:[#allocation5 + $0x26]]  ;;  %vm849_vm4 = vcmp.ge.f32.partialorder %v529_v15, %v227_v1  ;;  %v231_v9 = vstv %s780_s13  ;;  %vm859_vm5 = vcmp.ge.f32.partialorder %v531_v16, %v227_v1 }
  0x3e   :  { %s854_s20 = sld [smem:[#allocation3 + $0xd]]  ;;  %v235_v14 = vstv %s791_s14  ;;  %v232_v20 = vsel %vm849_vm4, %v231_v9, %v216_v6  ;;  %v233_v22 = vsel %vm859_vm5, %v231_v9, %v217_v10 }
  0x3f   :  { %s863_s21 = sld [smem:[#allocation5 + $0x27]]  ;;  %v239_v21 = vstv %s804_s15  ;;  %v236_v26 = vsel %vm849_vm4, %v235_v14, %v220_v12  ;;  %v237_v27 = vsel %vm859_vm5, %v235_v14, %v221_v13 }
  0x40   :  { %v243_v17 = vstv %s812_s16  ;;  %s871_s22 = sld [smem:[#allocation5 + $0x28]]  ;;  %v240_v30 = vsel %vm849_vm4, %v239_v21, %v224_v19  ;;  %v241_v41 = vsel %vm859_vm5, %v239_v21, %v225_v29 }
  0x41   :  { %s880_s23 = sld [smem:[#allocation5 + $0x29]]  ;;  %vm885_vm6 = vcmp.ge.f32.partialorder %v529_v15, %v243_v17  ;;  %vm890_vm7 = vcmp.ge.f32.partialorder %v531_v16, %v243_v17  ;;  %v247_v25 = vstv %s822_s17 }
  0x42   :  { %s895_s24 = sld [smem:[#allocation3 + $0xe]]  ;;  %v251_v28 = vstv %s834_s18  ;;  %v248_v33 = vsel %vm885_vm6, %v247_v25, %v232_v20  ;;  %v249_v34 = vsel %vm890_vm7, %v247_v25, %v233_v22 }
  0x43   :  { %s902_s1 = sld [smem:[#allocation5 + $0x2a]]  ;;  %v255_v31 = vstv %s843_s19  ;;  %v252_v37 = vsel %vm885_vm6, %v251_v28, %v236_v26  ;;  %v253_v38 = vsel %vm890_vm7, %v251_v28, %v237_v27 }
  0x44   :  { %v259_v32 = vstv %s854_s20  ;;  %s910_s25 = sld [smem:[#allocation5 + $0x2b]]  ;;  %v256_v42 = vsel %vm885_vm6, %v255_v31, %v240_v30  ;;  %v257_v51 = vsel %vm890_vm7, %v255_v31, %v241_v41 }
  0x45   :  { %vm917_vm8 = vcmp.ge.f32.partialorder %v529_v15, %v259_v32  ;;  %vm922_vm9 = vcmp.ge.f32.partialorder %v531_v16, %v259_v32  ;;  %s926_s26 = sld [smem:[#allocation5 + $0x2c]]  ;;  %v263_v39 = vstv %s863_s21 }
  0x46   :  { %v267_v40 = vstv %s871_s22  ;;  %s412_s2 = sld [smem:[#allocation3 + $0xf]]  ;;  %v264_v43 = vsel %vm917_vm8, %v263_v39, %v248_v33  ;;  %v265_v44 = vsel %vm922_vm9, %v263_v39, %v249_v34 }
  0x47   :  { %s413_s27 = sld [smem:[#allocation5 + $0x2d]]  ;;  %v271_v45 = vstv %s880_s23  ;;  %v268_v47 = vsel %vm917_vm8, %v267_v40, %v252_v37  ;;  %v269_v48 = vsel %vm922_vm9, %v267_v40, %v253_v38 }
  0x48   :  { %v275_v46 = vstv %s895_s24  ;;  %s414_s28 = sld [smem:[#allocation5 + $0x2e]]  ;;  %v272_v54 = vsel %vm917_vm8, %v271_v45, %v256_v42  ;;  %v273_v61 = vsel %vm922_vm9, %v271_v45, %v257_v51 }
  0x49   :  { %vm949_vm10 = vcmp.ge.f32.partialorder %v529_v15, %v275_v46  ;;  %vm954_vm11 = vcmp.ge.f32.partialorder %v531_v16, %v275_v46  ;;  %s415_s29 = sld [smem:[#allocation5 + $0x2f]]  ;;  %v279_v52 = vstv %s902_s1 }
  0x4a   :  { %v283_v53 = vstv %s910_s25  ;;  %v280_v55 = vsel %vm949_vm10, %v279_v52, %v264_v43  ;;  %v281_v56 = vsel %vm954_vm11, %v279_v52, %v265_v44 }
  0x4b   :  { %v284_v57 = vsel %vm949_vm10, %v283_v53, %v268_v47  ;;  %v285_v58 = vsel %vm954_vm11, %v283_v53, %v269_v48  ;;  %v287_v59 = vstv %s926_s26 }
  0x4c   :  { %v291_v60 = vstv %s412_s2  ;;  %v288_v62 = vsel %vm949_vm10, %v287_v59, %v272_v54  ;;  %v289_v5 = vsel %vm954_vm11, %v287_v59, %v273_v61 }
  0x4d   :  { %vm292_vm12 = vcmp.ge.f32.partialorder %v529_v15, %v291_v60  ;;  %vm293_vm13 = vcmp.ge.f32.partialorder %v531_v16, %v291_v60  ;;  %v295_v63 = vstv %s413_s27 }
  0x4e   :  { %v299_v0 = vstv %s414_s28  ;;  %v296_v1 = vsel %vm292_vm12, %v295_v63, %v280_v55  ;;  %v297_v2 = vsel %vm293_vm13, %v295_v63, %v281_v56 }
  0x4f   :  { %v300_v3 = vsel %vm292_vm12, %v299_v0, %v284_v57  ;;  %v301_v4 = vsel %vm293_vm13, %v299_v0, %v285_v58  ;;  %v303_v6 = vstv %s415_s29  ;;  %v306_v7 = vmul.f32 %v296_v1, %v529_v15 }
  0x50   :  { %v307_v8 = vmul.f32 %v297_v2, %v531_v16  ;;  %v304_v11 = vsel %vm292_vm12, %v303_v6, %v288_v62  ;;  %v305_v12 = vsel %vm293_vm13, %v303_v6, %v289_v5 }
  0x51   :  { %v308_v9 = vadd.f32 %v306_v7, %v300_v3 }
  0x52   :  { %v309_v10 = vadd.f32 %v307_v8, %v301_v4 }
  0x53   :  { %v310_v13 = vmul.f32 %v308_v9, %v529_v15 }
  0x54   :  { %v311_v14 = vmul.f32 %v309_v10, %v531_v16 }
  0x55   :  { %v312_v17 = vadd.f32 %v310_v13, %v304_v11 }
  0x56   :  { %v313_v18 = vadd.f32 %v311_v14, %v305_v12 }
  0x58   :  { %v314_v19 = vadd.f32 %v313_v18, %v312_v17 }
  0x5a   :  { %v315_v20 = vrot.slane %v314_v19, 4 }
  0x5c   :  { %v316_v21 = vadd.f32 %v315_v20, %v314_v19 }
  0x5e   :  { %v317_v22 = vrot.slane %v316_v21, 2 }
  0x60   :  { %v318_v23 = vadd.f32 %v317_v22, %v316_v21 }
  0x62   :  { %v319_v24 = vrot.slane %v318_v23, 1 }
  0x64   :  { %v320_v25 = vadd.f32 %v319_v24, %v318_v23 }
  0x66   :  { %v321_v26 = vmax.f32 %v320_v25, 1.0 }
  0x68   :  { %418 = vrcp.f32 %v321_v26  ;;  %v333_v29 = vand.u32 2147483648, %v321_v26  ;;  %vm327_vm14 = vweird.f32 %v321_v26  ;;  %v331_v15 = vand.u32 2147483647, %v321_v26 }
  0x6a   :  { %v334_v16 = vor.u32 1.1754944e-38, %v333_v29  ;;  %vm332_vm1 = vcmp.eq.f32.partialorder %v331_v15, 8.507059e+37 }
  0x6e   :  { %v419_v27 = vpop.eup %418 }
  0x6f   :  { %v323_v28 = vmul.f32 %v419_v27, %v321_v26  ;;  %vm328_vm15 = vweird.f32 %v419_v27 }
  0x70   :  { %vm329_vm0 = vmor %vm327_vm14, %vm328_vm15 }
  0x71   :  { %v324_v30 = vsub.f32 1.0, %v323_v28 }
  0x73   :  { %v325_v31 = vmul.f32 %v419_v27, %v324_v30 }
  0x75   :  { %v326_v32 = vadd.f32 %v419_v27, %v325_v31 }
  0x77   :  { %v330_v33 = vsel %vm329_vm0, %v419_v27, %v326_v32 }
  0x78   :  { %v335_v34 = vsel %vm332_vm1, %v334_v16, %v330_v33 }
  0x79   :  { %v336_v35 = vmul.f32 2.1474836e+09, %v335_v34 }
  0x7b   :  { %v337_v36 = vfloor.f32 %v336_v35 }
  0x7d   :  { %v338_v37 = vmin.f32 %v337_v36, 16777216.0 }
  0x7f   :  { %v339_v38 = vmul.f32 5.9604645e-08, %v338_v37 }
  0x81   :  { %v340_v39 = vmul.f32 %v339_v38, %v312_v17  ;;  %v341_v40 = vmul.f32 %v339_v38, %v313_v18 }
  0x83   :  { %v342_v41 = vfloor.f32 %v340_v39  ;;  %v343_v42 = vfloor.f32 %v341_v40 }
  0x85   :  { %v344_v43 = vmul.f32 0.0078125, %v342_v41  ;;  %v345_v44 = vmul.f32 0.0078125, %v343_v42 }
  0x87   :  { %346 = vst [vmem:[%s995_s4] sm:$0xff] %v344_v43 }
  0x88   :  { %347 = vst [vmem:[%s995_s4 + $0x8] sm:$0xff] %v345_v44 }
  0x89   :  { %352 = vsyncpa [#allocation4], 1 }
  0x8a   :  { %353 = vsyncpa [#allocation6], 1 }

</bundles_post_ra>
